<compile_context>
chip_gen: v7x
topology: tpu7x:2x2x1
jax: 0.10.0
libtpu: 0.0.40
codegen_flags: <defaults>
</compile_context>

<pallas_src>
import math

import numpy as np
import jax
import jax.numpy as jnp
from jax.experimental import pallas as pl
from jax.experimental.pallas import tpu as pltpu


def _round_up(x, m):
    return ((x + m - 1) // m) * m


def _patch_merge_kernel(x_ref, w_ref, b_ref, o_ref):
    """One grid step.

    x_ref: (g, 2, W, 2C)  natural-layout input patches (no transpose needed)
    w_ref: (2, 2C, tn)    the two s1-halves of the (4C, n_out) weight
    b_ref: (1, tn)        bias
    o_ref: (g*W, tn)      2-D output block (single store per step)
    """
    g, _, wp, kh = x_ref.shape
    rows = g * wp
    x0 = x_ref[:, 0].reshape(rows, kh)                 # s1 = 0 rows
    x1 = x_ref[:, 1].reshape(rows, kh)                 # s1 = 1 rows
    acc = jnp.dot(x0, w_ref[0], preferred_element_type=jnp.float32)
    acc = acc + jnp.dot(x1, w_ref[1], preferred_element_type=jnp.float32)
    acc = acc + b_ref[...].astype(jnp.float32)         # single bias add / block
    o_ref[...] = acc.astype(o_ref.dtype)


def patch_merging(x, w, b, *, h_patches=None, w_patches=None):
    """PatchMerging forward.

    x: (B, num_patches, C) with num_patches = (2*h_patches) * (2*w_patches)
    w: (4*C, n_out)   (PyTorch nn.Linear weight transposed -> computes x @ w)
    b: (n_out,)
    returns (B, num_patches // 4, n_out)
    """
    B, N, C = x.shape
    if h_patches is None or w_patches is None:
        side = int(round(np.sqrt(N)))
        if side * side != N or side % 2 != 0:
            raise ValueError(
                "num_patches must be a perfect square with even side "
                "(or pass h_patches/w_patches explicitly)")
        h_patches = w_patches = side // 2
    hp, wp = int(h_patches), int(w_patches)
    if 4 * hp * wp != N:
        raise ValueError("num_patches must equal 4 * h_patches * w_patches")

    K, n_out = w.shape
    if K != 4 * C:
        raise ValueError("weight must have shape (4*C, n_out)")
    if b.shape != (n_out,):
        raise ValueError("bias must have shape (n_out,)")

    k_half = 2 * C
    bh = B * hp                       # number of (b, h) row-groups
    m_rows = bh * wp                  # total output rows
    out_dtype = x.dtype

    itm_x = np.dtype(x.dtype).itemsize
    itm_w = np.dtype(w.dtype).itemsize
    itm_b = np.dtype(b.dtype).itemsize
    itm_o = np.dtype(out_dtype).itemsize

    # --- copy-free views (pure reshapes of contiguous data, no transpose) ----
    x4 = x.reshape(bh, 2, wp, k_half)          # (b*h, s1, w, (s2 c))
    w3 = w.reshape(2, k_half, n_out)           # s1-major halves of the weight
    b2 = b.reshape(1, n_out)

    # --- generation-aware VMEM sizing ----------------------------------------
    try:
        vmem_cap = int(pltpu.get_tpu_info().vmem_capacity_bytes)
    except Exception:
        vmem_cap = 64 * 1024 * 1024            # conservative (v7x per-core)
    vmem_budget = (vmem_cap * 3) // 8          # 128 MiB -> 48 MiB, 64 MiB -> 24 MiB

    # Tile the weight N dimension only if keeping the whole (double-buffered)
    # weight resident would eat more than half the data budget (huge d_model).
    tn = n_out
    while 2 * k_half * tn * itm_w * 2 > vmem_budget // 2 and tn > 128:
        tn = _round_up(pl.cdiv(tn, 2), 128)
    n_col_blocks = pl.cdiv(n_out, tn)

    # Rows per grid step: g whole (b, h) groups = g*wp output rows.
    sub = max(8, 32 // itm_o)                  # sublane packing of the out tile
    g_step = sub // math.gcd(sub, wp)          # g multiple => (g*wp) % sub == 0
    per_group = (2 * wp * k_half * itm_x + wp * tn * itm_o) * 2   # dbl-buffered
    fixed = 2 * k_half * tn * itm_w * 2 + tn * itm_b * 2
    g_fit = max(1, (vmem_budget - fixed) // per_group)
    g_dma_cap = max(1, (8 * 1024 * 1024) // (2 * wp * k_half * itm_x))
    g_tc_cap = pl.cdiv(bh, 2) if bh >= 2 else 1    # >=2 row steps (v7x megacore)
    g = min(g_fit, g_dma_cap, g_tc_cap)
    g = (g // g_step) * g_step
    if g <= 0:
        g = bh                                  # block rows == m_rows: always legal

    n_row_blocks = pl.cdiv(bh, g)

    def _vmem_bytes(g_):
        return (g_ * 2 * wp * k_half * itm_x * 2        # input block  (x2 buffers)
                + g_ * wp * tn * itm_o * 2              # output block (x2 buffers)
                + 2 * k_half * tn * itm_w * 2           # weight block (x2 buffers)
                + tn * itm_b * 2)                       # bias

    need = _vmem_bytes(g)
    vmem_limit = int(min((vmem_cap * 3) // 4, max(32 * 1024 * 1024, 2 * need)))
    vmem_limit = int(max(vmem_limit, need + (4 << 20)))  # headroom for scratch

    cost = pl.CostEstimate(
        flops=2 * m_rows * (4 * C) * n_out,
        transcendentals=0,
        bytes_accessed=int(x.size * itm_x + w.size * itm_w
                           + b.size * itm_b + m_rows * n_out * itm_o),
    )

    out2 = pl.pallas_call(
        _patch_merge_kernel,
        out_shape=jax.ShapeDtypeStruct((m_rows, n_out), out_dtype),
        grid_spec=pltpu.PrefetchScalarGridSpec(
            num_scalar_prefetch=0,
            grid=(n_row_blocks, n_col_blocks),
            in_specs=[
                pl.BlockSpec((g, 2, wp, k_half), lambda i, j: (i, 0, 0, 0)),
                pl.BlockSpec((2, k_half, tn), lambda i, j: (0, 0, j)),
                pl.BlockSpec((1, tn), lambda i, j: (0, j)),
            ],
            out_specs=pl.BlockSpec((g * wp, tn), lambda i, j: (i, j)),
        ),
        compiler_params=pltpu.CompilerParams(
            dimension_semantics=("parallel", "arbitrary"),
            vmem_limit_bytes=vmem_limit,
        ),
        cost_estimate=cost,
    )(x4, w3, b2)

    return out2.reshape(B, hp * wp, n_out)


def _reference(x, w, b, hp, wp):
    """Pure-numpy float64 reference of the module's rearrange + linear."""
    x = np.asarray(x, dtype=np.float64)
    w = np.asarray(w, dtype=np.float64)
    b = np.asarray(b, dtype=np.float64)
    B, N, C = x.shape
    xr = x.reshape(B, hp, 2, wp, 2, C).transpose(0, 1, 3, 2, 4, 5)
    xr = xr.reshape(B, hp * wp, 4 * C)
    return xr @ w + b


if __name__ == "__main__":
    key = jax.random.PRNGKey(0)
    kx, kw, kb, kx2, kw2, kb2 = jax.random.split(key, 6)

    # Small shapes consistent with the module:
    #   batch=2, d_model=32, 16x16 patch grid -> num_patches=256 (merged to 64).
    B, d_model = 2, 32
    hp = wp = 8
    num_patches = 4 * hp * wp          # 256

    x = jax.random.normal(kx, (B, num_patches, d_model), dtype=jnp.float32)

    # nn.Linear(4*d_model, 2*d_model) default init; weight stored transposed
    # as (in, out) so the kernel computes x @ w.
    fan_in = 4 * d_model
    bound = 1.0 / np.sqrt(fan_in)
    w = jax.random.uniform(kw, (4 * d_model, 2 * d_model),
                           minval=-bound, maxval=bound, dtype=jnp.float32)
    b = jax.random.uniform(kb, (2 * d_model,),
                           minval=-bound, maxval=bound, dtype=jnp.float32)

    out = jax.block_until_ready(patch_merging(x, w, b))
    assert out.shape == (B, num_patches // 4, 2 * d_model)
    ref = _reference(x, w, b, hp, wp)
    np.testing.assert_allclose(np.asarray(out, dtype=np.float64), ref,
                               rtol=1e-5, atol=1e-5)

    # bf16 x/out stream (halves HBM bytes on the mem-bound path; f32 accumulation).
    out_bf16 = jax.block_until_ready(
        patch_merging(x.astype(jnp.bfloat16), w.astype(jnp.bfloat16),
                      b.astype(jnp.bfloat16)))
    np.testing.assert_allclose(np.asarray(out_bf16, dtype=np.float64), ref,
                               rtol=5e-2, atol=5e-2)

    # Ragged-grid check: bh = B*hp = 9 is not divisible by the chosen g,
    # exercising the masked last row block.
    B2, d2, hp2, wp2 = 3, 16, 3, 8
    n2 = 4 * hp2 * wp2
    x_r = jax.random.normal(kx2, (B2, n2, d2), dtype=jnp.float32)
    w_r = jax.random.uniform(kw2, (4 * d2, 2 * d2),
                             minval=-0.1, maxval=0.1, dtype=jnp.float32)
    b_r = jax.random.uniform(kb2, (2 * d2,),
                             minval=-0.1, maxval=0.1, dtype=jnp.float32)
    out_r = jax.block_until_ready(
        patch_merging(x_r, w_r, b_r, h_patches=hp2, w_patches=wp2))
    ref_r = _reference(x_r, w_r, b_r, hp2, wp2)
    np.testing.assert_allclose(np.asarray(out_r, dtype=np.float64), ref_r,
                               rtol=1e-5, atol=1e-5)

    print("KERNEL_OK")
</pallas_src>

<mosaic_0001>
module attributes {stable_mosaic.version = 11 : i64} {
  func.func @_patch_merge_kernel(%arg0: i32, %arg1: i32, %arg2: memref<8x2x8x64xf32, #tpu.memory_space<vmem>>, %arg3: memref<2x64x64xf32, #tpu.memory_space<vmem>>, %arg4: memref<1x64xf32, #tpu.memory_space<vmem>>, %arg5: memref<64x64xf32, #tpu.memory_space<vmem>>) attributes {dimension_semantics = [#tpu.dimension_semantics<parallel>, #tpu.dimension_semantics<arbitrary>], iteration_bounds = array<i64: 2, 1>, scalar_prefetch = 0 : i64, scratch_operands = 0 : i64, tpu.core_type = #tpu.core_type<tc>, window_params = [{transform_indices = @transform_0, window_bounds = array<i64: 8, 2, 8, 64>}, {transform_indices = @transform_1, window_bounds = array<i64: 2, 64, 64>}, {transform_indices = @transform_2, window_bounds = array<i64: 1, 64>}, {transform_indices = @transform_3, window_bounds = array<i64: 64, 64>}]} {
    %c0 = arith.constant 0 : index
    %c0_0 = arith.constant 0 : index
    %c0_1 = arith.constant 0 : index
    %c0_2 = arith.constant 0 : index
    %0 = vector.load %arg2[%c0, %c0_0, %c0_1, %c0_2] : memref<8x2x8x64xf32, #tpu.memory_space<vmem>>, vector<8x1x8x64xf32>
    %1 = vector.shape_cast %0 : vector<8x1x8x64xf32> to vector<8x8x64xf32>
    %2 = vector.shape_cast %1 : vector<8x8x64xf32> to vector<64x64xf32>
    %c0_3 = arith.constant 0 : index
    %c1 = arith.constant 1 : index
    %c0_4 = arith.constant 0 : index
    %c0_5 = arith.constant 0 : index
    %3 = vector.load %arg2[%c0_3, %c1, %c0_4, %c0_5] : memref<8x2x8x64xf32, #tpu.memory_space<vmem>>, vector<8x1x8x64xf32>
    %4 = vector.shape_cast %3 : vector<8x1x8x64xf32> to vector<8x8x64xf32>
    %5 = vector.shape_cast %4 : vector<8x8x64xf32> to vector<64x64xf32>
    %c0_6 = arith.constant 0 : index
    %c0_7 = arith.constant 0 : index
    %c0_8 = arith.constant 0 : index
    %6 = vector.load %arg3[%c0_6, %c0_7, %c0_8] : memref<2x64x64xf32, #tpu.memory_space<vmem>>, vector<1x64x64xf32>
    %7 = vector.shape_cast %6 : vector<1x64x64xf32> to vector<64x64xf32>
    %cst = arith.constant dense<0.000000e+00> : vector<64x64xf32>
    %8 = tpu.matmul %2, %7, %cst {dimension_numbers = #tpu.dot_dimension_numbers<[1], [0], [0], [1], [0, 0, 1, 1], [], []>} : vector<64x64xf32>, vector<64x64xf32>, vector<64x64xf32> -> vector<64x64xf32>
    %c1_9 = arith.constant 1 : index
    %c0_10 = arith.constant 0 : index
    %c0_11 = arith.constant 0 : index
    %9 = vector.load %arg3[%c1_9, %c0_10, %c0_11] : memref<2x64x64xf32, #tpu.memory_space<vmem>>, vector<1x64x64xf32>
    %10 = vector.shape_cast %9 : vector<1x64x64xf32> to vector<64x64xf32>
    %cst_12 = arith.constant dense<0.000000e+00> : vector<64x64xf32>
    %11 = tpu.matmul %5, %10, %cst_12 {dimension_numbers = #tpu.dot_dimension_numbers<[1], [0], [0], [1], [0, 0, 1, 1], [], []>} : vector<64x64xf32>, vector<64x64xf32>, vector<64x64xf32> -> vector<64x64xf32>
    %12 = arith.addf %8, %11 : vector<64x64xf32>
    %c0_13 = arith.constant 0 : index
    %c0_14 = arith.constant 0 : index
    %13 = vector.load %arg4[%c0_13, %c0_14] : memref<1x64xf32, #tpu.memory_space<vmem>>, vector<1x64xf32>
    %14 = vector.broadcast %13 : vector<1x64xf32> to vector<64x64xf32>
    %15 = arith.addf %12, %14 : vector<64x64xf32>
    %c0_15 = arith.constant 0 : index
    %c0_16 = arith.constant 0 : index
    %16 = vector.load %arg5[%c0_15, %c0_16] : memref<64x64xf32, #tpu.memory_space<vmem>>, vector<64x64xf32>
    tpu.vector_store %arg5[%c0_15, %c0_16], %15 {strides = array<i32>} : memref<64x64xf32, #tpu.memory_space<vmem>>, vector<64x64xf32>,
    return
  }
  func.func @transform_0(%arg0: i32, %arg1: i32) -> (i32, i32, i32, i32) {
    %c0_i32 = arith.constant 0 : i32
    %c0_i32_0 = arith.constant 0 : i32
    %c0_i32_1 = arith.constant 0 : i32
    %c0_i32_2 = arith.constant 0 : i32
    return %arg0, %c0_i32, %c0_i32_0, %c0_i32_1 : i32, i32, i32, i32
  }
  func.func @transform_1(%arg0: i32, %arg1: i32) -> (i32, i32, i32) {
    %c0_i32 = arith.constant 0 : i32
    %c0_i32_0 = arith.constant 0 : i32
    %c0_i32_1 = arith.constant 0 : i32
    return %c0_i32, %c0_i32_0, %arg1 : i32, i32, i32
  }
  func.func @transform_2(%arg0: i32, %arg1: i32) -> (i32, i32) {
    %c0_i32 = arith.constant 0 : i32
    %c0_i32_0 = arith.constant 0 : i32
    return %c0_i32, %arg1 : i32, i32
  }
  func.func @transform_3(%arg0: i32, %arg1: i32) -> (i32, i32) {
    %c0_i32 = arith.constant 0 : i32
    return %arg0, %arg1 : i32, i32
  }
}

</mosaic_0001>

<bundles_post_ra>
// kernel: tpu_custom_call.1
= control target key start
LH: loop header
LB: loop body
LE: loop exit
PB: predicated region body
PF: predicated region fallthrough
CT: control target
= control target key end

     0   :  { %8 = vsyncpa [#allocation3], 0  ;;  %s1272_s0 = inlined_call_operand.hbm [shape: f32[16,2,8,64], index: 0, kind: input, shape index: {}]   ;;  %s1273_s1 = inlined_call_operand.hbm [shape: f32[2,64,64], index: 1, kind: input, shape index: {}]   ;;  %s1274_s2 = inlined_call_operand.vmem [shape: f32[1,64], index: 2, kind: input, shape index: {}]   ;;  %s1275_s3 = inlined_call_operand.vmem [shape: f32[128,64], index: 3, kind: output, shape index: {}]  }
   0x1   :  { %10 = vsyncpa [#allocation3 + $0x1], 0 }
   0x2   :  { %11 = vsyncpa [#allocation5], 0  ;;  %s1054_s12 = smov 0   ;;  %s1056_s13 = smov 0  }
   0x3   :  { %s1058_s14 = smov 0   ;;  %s1060_s15 = smov 0  }
   0x4   :  { %s1062_s16 = smov 0   ;;  %s1064_s17 = smov 0  }
   0x5 LB: > { %s676_s18 = sadd.s32 4294967295, %s1028_s17   ;;  %p49_p0 = scmp.ne.s32.totalorder %s1012_s13, %s1008_s12  ;;  %s1028_s17 = sphi %s1064_s17, %s17_s17   ;;  %s1024_s16 = sphi %s1062_s16, %s1292_s16   ;;  %s1020_s15 = sphi %s1060_s15, %s1291_s15   ;;  %s1016_s14 = sphi %s1058_s14, %s1290_s14   ;;  %s1012_s13 = sphi %s1056_s13, %s1289_s13   ;;  %s1008_s12 = sphi %s1054_s12, %s1288_s12  }
   0x6   : > { %p1084_p1 = scmp.eq.s32.totalorder %s676_s18, 0  ;;  %p678_p2 = scmp.ge.s32.totalorder %s1028_s17, 1 }
   0x7   : > { %p140_p3 = scmp.lt.s32.totalorder %s1028_s17, 3  ;;  %s1030_s22 = smov [#allocation4]  }
   0x8   : > { %s1280_s19 = scalar_select %p1084_p1, 1, 0 }
   0x9   : > { %p1092_p4 = por %p1084_p1, %p49_p0  ;;  %p1096_p5 = pnand %p678_p2, %p140_p3 }
   0xa   : > { %s154_s23 = sshll.u32 %s1030_s22, 4  ;;  %s29_s25 = sadd.s32 1, %s1024_s16  ;;  %s155_s23 = int_to_ptr.vmem [resolvable:$true] %s154_s23 }
   0xb   : > { %s1281_s20 = scalar_select %p1092_p4, 1, 0 }
   0xc   : > { %s1282_s21 = scalar_select %p1096_p5, 1, 0 }
   0xd   : > { %p854_p6 = pneg %p1096_p5  ;;  %s916_s28 = scalar_lea.hbm %s1273_s1, 2048 }
   0xe   : > { %p917_p8 = scmp.ne.s32.totalorder %s1273_s1, %s916_s28  ;;  %p923_p12 = scmp.lt.u32.totalorder %s916_s28, %s1273_s1 }
   0xf   : > { %p1104_p7 = pnand %p854_p6, %p1084_p1 }
  0x11   : > { %p918_p9 = pneg %p1104_p7 }
  0x13   : > { %p919_p10 = pnand %p918_p9, %p917_p8 }
  0x15   : > { %p920_p11 = pneg %p919_p10 }
  0x17   : > { %p925_p13 = pnand %p923_p12, %p920_p11 }
  0x19   : > { %928 = shalt.err (!%p925_p13)
}
  0x1a   : > { %s929_s6 = scalar_lea.vmem %s155_s23, 2048  ;;  %p937_p6 = scmp.lt.s32.totalorder %s155_s23, %s155_s23 }
  0x1b   : > { %p930_p0 = scmp.ne.s32.totalorder %s155_s23, %s929_s6  ;;  %p938_p1 = scmp.lt.s32.totalorder %s929_s6, %s929_s6 }
  0x1d   : > { %p932_p2 = pnand %p930_p0, %p918_p9  ;;  %p939_p4 = por %p938_p1, %p937_p6 }
  0x1f   : > { %p933_p3 = pneg %p932_p2 }
  0x21   : > { %p940_p5 = pnand %p939_p4, %p933_p3 }
  0x23   : > { %943 = shalt.err (!%p940_p5)
}
  0x24   : > { %s1031_s7 = smov 128   ;;  %s1032_s8 = smov 8  }
  0x25   : > { %857 = dma.hbm_to_vmem [thread:$0]  (!%p1104_p7), %s1273_s1, 2048, %s155_s23, [#allocation5], %s1031_s7, %s1031_s7, %s1032_s8  }
  0x26   : > { %p31_p1 = scmp.ge.s32.totalorder %s29_s25, 2  ;;  %s36_s11 = sadd.s32 1, %s1016_s14 }
  0x27   : > { %p43_p4 = scmp.ne.s32.totalorder %s1016_s14, %s1012_s13  ;;  %p44_p5 = scmp.eq.s32.totalorder %s1028_s17, 0 }
  0x28   : > { %s1294_s25 = smov (%p31_p1, %s29_s25), 0  ;;  %p863_p9 = scmp.lt.s32.totalorder %s1028_s17, 2 }
  0x29   : > { %p45_p8 = por %p44_p5, %p43_p4  ;;  %s33_s12 = ssub.s32 %s1024_s16, %s1294_s25 }
  0x2a   : > { %s174_s18 = sand.u32 1, %s1016_s14   ;;  %p34_p10 = scmp.eq.s32.totalorder %s33_s12, 0 }
  0x2b   : > { %s682_s22 = sshll.u32 %s174_s18, 7  ;;  %s719_s24 = sshll.u32 %s1024_s16, 11 }
  0x2c   : > { %s1140_s26 = scalar_select %p34_p10, %s1016_s14, %s36_s11  }
  0x2d   : > { %s1145_s23 = scalar_lea.hbm %s1272_s0, %s719_s24  ;;  %s178_s29 = scalar_lea.vmem [#allocation2], %s682_s22 }
  0x2e   : > { %s186_s30 = sshll.u32 %s178_s29, 4  ;;  %p1147_p7 = pnand %p863_p9, %p45_p8  ;;  %s1151_s30 = int_to_ptr.vmem [resolvable:$true] %s186_s30 }
  0x2f   : > { %s1153_s5 = scalar_lea.sflag [#allocation3], %s174_s18  ;;  %s944_s6 = scalar_lea.hbm %s1145_s23, 2048 }
  0x30   : > { %p945_p11 = scmp.ne.s32.totalorder %s1145_s23, %s944_s6  ;;  %p946_p12 = pneg %p1147_p7 }
  0x31   : > { %s949_s11 = scalar_lea.hbm %s1272_s0, 4096  ;;  %p950_p2 = scmp.lt.u32.totalorder %s1145_s23, %s1272_s0 }
  0x32   : > { %p947_p13 = pnand %p946_p12, %p945_p11  ;;  %p951_p3 = scmp.lt.u32.totalorder %s949_s11, %s944_s6 }
  0x33   : > { %p953_p1 = scmp.lt.u32.totalorder %s944_s6, %s1145_s23 }
  0x34   : > { %p948_p0 = pneg %p947_p13  ;;  %p952_p6 = por %p951_p3, %p950_p2 }
  0x36   : > { %p954_p4 = por %p953_p1, %p952_p6 }
  0x38   : > { %p955_p5 = pnand %p954_p4, %p948_p0 }
  0x3a   : > { %958 = shalt.err (!%p955_p5)
}
  0x3b   : > { %s959_s18 = scalar_lea.vmem %s1151_s30, 2048  ;;  %s1033_s24 = smov [#allocation2]  }
  0x3c   : > { %p960_p8 = scmp.ne.s32.totalorder %s1151_s30, %s959_s18  ;;  %s964_s27 = sshll.u32 %s1033_s24, 4  ;;  %s965_s27 = int_to_ptr.vmem [resolvable:$false] %s964_s27 }
  0x3d   : > { %s966_s28 = scalar_lea.vmem %s965_s27, 4096  ;;  %p967_p11 = scmp.lt.s32.totalorder %s1151_s30, %s965_s27 }
  0x3e   : > { %p962_p9 = pnand %p960_p8, %p946_p12  ;;  %p968_p13 = scmp.lt.s32.totalorder %s966_s28, %s959_s18 }
  0x40   : > { %p963_p10 = pneg %p962_p9  ;;  %p969_p2 = por %p968_p13, %p967_p11 }
  0x42   : > { %p970_p3 = pnand %p969_p2, %p963_p10 }
  0x44   : > { %973 = shalt.err (!%p970_p3)
}
  0x45   : > { %861 = dma.hbm_to_vmem [thread:$0]  (!%p1147_p7), %s1145_s23, 2048, %s1151_s30, %s1153_s5, %s1031_s7, %s1031_s7, %s1032_s8  }
  0x46   : > { %p1285_p12 = scmp.ne.s32.totalorder %s1282_s21, 0 }
  0x47   : > { %s200_s29 = sand.u32 (!%p1285_p12), 1, %s1012_s13   ;;  %p1286_p0 = scmp.ne.s32.totalorder (!%p1285_p12), %s1281_s20, 0 }
  0x48   : > { %198 = sbr.rel (%p1285_p12) target bundleno = 333 (0x14d), region = 32  ;;  %s687_s6 = sshll.u32 (!%p1285_p12), %s200_s29, 7 }
  0x49   : > { %s201_s9 = scalar_lea.sflag (!%p1285_p12), [#allocation3], %s200_s29  ;;  %s1187_s10 = scalar_lea.vmem (!%p1285_p12), [#allocation2], %s687_s6 }
  0x4f   : > { %999 = dma.done.wait (%p1286_p0), %s201_s9, 2048  }
  0x50   : > { %1001 = vsyncadd (%p1286_p0), %s201_s9, 4294965248  ;;  %p1287_p6 = scmp.ne.s32.totalorder %s1280_s19, 0 }
  0x52   : > { %1003 = dma.done.wait (%p1287_p6), [#allocation5], 2048  }
  0x53   : > { %1005 = vsyncadd (%p1287_p6), [#allocation5], 4294965248  ;;  %v276_v0 = vld [vmem:[#allocation4 + $0x40] sm:$0xff]  ;;  %v277_v1 = vld [vmem:[#allocation4 + $0x48] sm:$0xff]  ;;  %vm284_vm0 = vcmask 523264   ;;  %s689_s19 = sshll.u32 %s1020_s15, 3 }
  0x54   : > { %v267_v2 = vld [vmem:[#allocation4] sm:$0xff]  ;;  %v808_v3 = vpack.c.bf16 %v277_v1, %v276_v0  ;;  %v268_v4 = vld [vmem:[#allocation4 + $0x8] sm:$0xff]  ;;  %v278_v5 = vld [vmem:[#allocation4 + $0x50] sm:$0xff]  ;;  %p242_p7 = scmp.lt.s32.totalorder %s689_s19, 15 }
  0x55   : > { %v279_v6 = vld [vmem:[#allocation4 + $0x58] sm:$0xff]  ;;  %v824_v7 = vpack.c.bf16 %v268_v4, %v267_v2  ;;  %v269_v9 = vld [vmem:[#allocation4 + $0x10] sm:$0xff]  ;;  %v280_v11 = vld [vmem:[#allocation4 + $0x60] sm:$0xff] }
  0x56   : > { %v812_v8 = vpack.c.bf16 %v279_v6, %v278_v5  ;;  %v270_v10 = vld [vmem:[#allocation4 + $0x18] sm:$0xff]  ;;  %809 = vmatprep.subr.bf16.mxu1 %v808_v3  ;;  %v281_v13 = vld [vmem:[#allocation4 + $0x68] sm:$0xff]  ;;  %v271_v14 = vld [vmem:[#allocation4 + $0x20] sm:$0xff]  ;;  %s1296_s19 = smov (!%p242_p7, %s689_s19), 15 }
  0x57   : > { %v828_v12 = vpack.c.bf16 %v270_v10, %v269_v9  ;;  %v272_v15 = vld [vmem:[#allocation4 + $0x28] sm:$0xff]  ;;  %825 = vmatprep.subr.bf16.mxu0 %v824_v7  ;;  %811 = vmatpush3.bf16.msra.mxu1 %v808_v3  ;;  %v816_v16 = vpack.c.bf16 %v281_v13, %v280_v11  ;;  %v250_v18 = vld [vmem:[%s1187_s10] sm:$0xff]  ;;  %v282_v20 = vld [vmem:[#allocation4 + $0x70] sm:$0xff]  ;;  %s690_s20 = sshll.u32 %s1296_s19, 3 }
  0x58   : > { %827 = vmatpush3.bf16.msra.mxu0 %v824_v7  ;;  %813 = vmatprep.subr.bf16.mxu1 %v812_v8  ;;  %v691_v17 = vld [vmem:[%s1187_s10 + $0x8] sm:$0xff]  ;;  %v832_v19 = vpack.c.bf16 %v272_v15, %v271_v14  ;;  %v283_v21 = vld [vmem:[#allocation4 + $0x78] sm:$0xff]  ;;  %v273_v22 = vld [vmem:[#allocation4 + $0x30] sm:$0xff]  ;;  %s1236_s30 = scalar_lea.vmem %s1275_s3, %s690_s20 }
  0x59   : > { %829 = vmatprep.subr.bf16.mxu0 %v828_v12  ;;  %768 = vmatprep.mubr.msk.f32.mxu1 %vm284_vm0, %v691_v17  ;;  %v274_v23 = vld [vmem:[#allocation4 + $0x38] sm:$0xff]  ;;  %v820_v24 = vpack.c.bf16 %v283_v21, %v282_v20  ;;  %v251_v27 = vld [vmem:[%s1187_s10 + $0x10] sm:$0xff]  ;;  %v693_v28 = vld [vmem:[%s1187_s10 + $0x28] sm:$0xff] }
  0x5a   : > { %796 = vmatprep.mubr.msk.f32.mxu0 %vm284_vm0, %v250_v18  ;;  %v836_v25 = vpack.c.bf16 %v274_v23, %v273_v22  ;;  %v692_v26 = vld [vmem:[%s1187_s10 + $0x18] sm:$0xff]  ;;  %v252_v29 = vld [vmem:[%s1187_s10 + $0x20] sm:$0xff]  ;;  %v253_v31 = vld [vmem:[%s1187_s10 + $0x30] sm:$0xff] }
  0x5b   : > { %815 = vmatpush3.bf16.msra.mxu1 %v812_v8  ;;  %v694_v30 = vld [vmem:[%s1187_s10 + $0x38] sm:$0xff]  ;;  %v695_v32 = vld [vmem:[%s1187_s10 + $0x48] sm:$0xff]  ;;  %v254_v33 = vld [vmem:[%s1187_s10 + $0x40] sm:$0xff] }
  0x5c   : > { %831 = vmatpush3.bf16.msra.mxu0 %v828_v12  ;;  %817 = vmatprep.subr.bf16.mxu1 %v816_v16  ;;  %v696_v34 = vld [vmem:[%s1187_s10 + $0x58] sm:$0xff]  ;;  %v255_v35 = vld [vmem:[%s1187_s10 + $0x50] sm:$0xff]  ;;  %v697_v36 = vld [vmem:[%s1187_s10 + $0x68] sm:$0xff] }
  0x5d   : > { %833 = vmatprep.subr.bf16.mxu0 %v832_v19  ;;  %v256_v37 = vld [vmem:[%s1187_s10 + $0x60] sm:$0xff]  ;;  %v698_v38 = vld [vmem:[%s1187_s10 + $0x78] sm:$0xff]  ;;  %v257_v39 = vld [vmem:[%s1187_s10 + $0x70] sm:$0xff] }
  0x5e   : > { %v715_v42 = vld [vmem:[%s1274_s2] ss:$0 sm:$0xff] }
  0x5f   : > { %819 = vmatpush3.bf16.msra.mxu1 %v816_v16 }
  0x60   : > { %835 = vmatpush3.bf16.msra.mxu0 %v832_v19  ;;  %821 = vmatprep.subr.bf16.mxu1 %v820_v24 }
  0x61   : > { %837 = vmatprep.subr.bf16.mxu0 %v836_v25 }
  0x63   : > { %823 = vmatpush3.bf16.msra.mxu1 %v820_v24 }
  0x64   : > { %839 = vmatpush3.bf16.msra.mxu0 %v836_v25 }
  0x66   : > { %769 = vmatmul.mubr.msk.f32.vlgmr.msra.gmra.mrb[0].mxu1 %vm284_vm0, %v692_v26 }
  0x67   : > { %797 = vmatmul.mubr.msk.f32.vlgmr.msra.gmra.mrb[0].mxu0 %vm284_vm0, %v251_v27  ;;  %771 = vmatprep.mubr.msk.f32.mxu1 %vm284_vm0, %v693_v28 }
  0x68   : > { %799 = vmatprep.mubr.msk.f32.mxu0 %vm284_vm0, %v252_v29 }
  0x6a   : > { %772 = vmatmul.mubr.msk.f32.gmra.mrb[2].mxu1 %vm284_vm0, %v694_v30 }
  0x6b   : > { %800 = vmatmul.mubr.msk.f32.gmra.mrb[2].mxu0 %vm284_vm0, %v253_v31  ;;  %774 = vmatprep.mubr.msk.f32.mxu1 %vm284_vm0, %v695_v32 }
  0x6c   : > { %802 = vmatprep.mubr.msk.f32.mxu0 %vm284_vm0, %v254_v33 }
  0x6e   : > { %775 = vmatmul.mubr.msk.f32.gmra.mrb[4].mxu1 %vm284_vm0, %v696_v34 }
  0x6f   : > { %803 = vmatmul.mubr.msk.f32.gmra.mrb[4].mxu0 %vm284_vm0, %v255_v35  ;;  %777 = vmatprep.mubr.msk.f32.mxu1 %vm284_vm0, %v697_v36 }
  0x70   : > { %805 = vmatprep.mubr.msk.f32.mxu0 %vm284_vm0, %v256_v37 }
  0x72   : > { %778 = vmatmul.mubr.msk.f32.gmra.mrb[6].mxu1 %vm284_vm0, %v698_v38 }
  0x73   : > { %806 = vmatmul.mubr.msk.f32.gmra.mrb[6].mxu0 %vm284_vm0, %v257_v39 }
 0x139   : > { %v770_v40 = vpop.f32.mrb[0].mxu1 }
 0x13a   : > { %v798_v41 = vpop.f32.mrb[0].mxu0  ;;  %v375_v43 = vpop.f32.mrb[1].mxu1 }
 0x13b   : > { %v510_v44 = vadd.f32 %v798_v41, %v770_v40  ;;  %v504_v45 = vpop.f32.mrb[1].mxu0 }
 0x13c   : > { %v505_v46 = vadd.f32 %v504_v45, %v375_v43 }
 0x13d   : > { %v551_v47 = vadd.f32 %v715_v42, %v510_v44  ;;  %v773_v48 = vpop.f32.mrb[2].mxu1 }
 0x13e   : > { %v550_v49 = vadd.f32 %v715_v42, %v505_v46  ;;  %v801_v50 = vpop.f32.mrb[2].mxu0  ;;  %v385_v51 = vpop.f32.mrb[3].mxu1 }
 0x13f   : > { %559 = vst.msk [vmem:[%s1236_s30 + $0x8] sm:$0xff] %vm284_vm0, %v551_v47  ;;  %v520_v52 = vadd.f32 %v801_v50, %v773_v48  ;;  %v514_v53 = vpop.f32.mrb[3].mxu0 }
 0x140   : > { %558 = vst.msk [vmem:[%s1236_s30] sm:$0xff] %vm284_vm0, %v550_v49  ;;  %v515_v54 = vadd.f32 %v514_v53, %v385_v51 }
 0x141   : > { %v553_v55 = vadd.f32 %v715_v42, %v520_v52  ;;  %v776_v56 = vpop.f32.mrb[4].mxu1 }
 0x142   : > { %v552_v57 = vadd.f32 %v715_v42, %v515_v54  ;;  %v804_v58 = vpop.f32.mrb[4].mxu0  ;;  %v395_v59 = vpop.f32.mrb[5].mxu1 }
 0x143   : > { %561 = vst.msk [vmem:[%s1236_s30 + $0x18] sm:$0xff] %vm284_vm0, %v553_v55  ;;  %v530_v60 = vadd.f32 %v804_v58, %v776_v56  ;;  %v524_v61 = vpop.f32.mrb[5].mxu0 }
 0x144   : > { %560 = vst.msk [vmem:[%s1236_s30 + $0x10] sm:$0xff] %vm284_vm0, %v552_v57  ;;  %v525_v62 = vadd.f32 %v524_v61, %v395_v59 }
 0x145   : > { %v555_v63 = vadd.f32 %v715_v42, %v530_v60  ;;  %v779_v0 = vpop.f32.mrb[6].mxu1 }
 0x146   : > { %v554_v1 = vadd.f32 %v715_v42, %v525_v62  ;;  %v807_v2 = vpop.f32.mrb[6].mxu0  ;;  %v405_v3 = vpop.f32.mrb[7].mxu1 }
 0x147   : > { %563 = vst.msk [vmem:[%s1236_s30 + $0x28] sm:$0xff] %vm284_vm0, %v555_v63  ;;  %v540_v4 = vadd.f32 %v807_v2, %v779_v0  ;;  %v534_v5 = vpop.f32.mrb[7].mxu0 }
 0x148   : > { %562 = vst.msk [vmem:[%s1236_s30 + $0x20] sm:$0xff] %vm284_vm0, %v554_v1  ;;  %v535_v6 = vadd.f32 %v534_v5, %v405_v3 }
 0x149   : > { %v557_v7 = vadd.f32 %v715_v42, %v540_v4 }
 0x14a   : > { %v556_v8 = vadd.f32 %v715_v42, %v535_v6 }
 0x14b   : > { %565 = vst.msk [vmem:[%s1236_s30 + $0x38] sm:$0xff] %vm284_vm0, %v557_v7 }
 0x14c   : > { %564 = vst.msk [vmem:[%s1236_s30 + $0x30] sm:$0xff] %vm284_vm0, %v556_v8 }
 0x14d PF: > { %s17_s17 = sadd.s32 1, %s1028_s17   ;;  %s1288_s12 = smov %s1012_s13 }
 0x14e   : > { %p14_p1 = scmp.ge.s32.totalorder %s17_s17, 4   ;;  %s1289_s13 = smov %s1016_s14 }
 0x14f   : > { %s1290_s14 = smov %s1140_s26  ;;  %s1291_s15 = smov %s1024_s16 }
 0x150   : > { %s1292_s16 = smov %s1294_s25  ;;  %16 = sbr.rel (!%p14_p1) target bundleno = 5 (0x5), region = 82 }
 0x157   :  { %594 = vsyncpa [#allocation3], 1 }
 0x158   :  { %596 = vsyncpa [#allocation3 + $0x1], 1 }
 0x159   :  { %597 = vsyncpa [#allocation5], 1 }

</bundles_post_ra>
